<compile_context>
chip_gen: v5e
topology: v5e:2x2
jax: 0.10.0
libtpu: 0.0.40
codegen_flags: <defaults>
</compile_context>

<pallas_src>
import math

import jax
import jax.numpy as jnp
import numpy as np
from jax import lax
from jax.experimental import pallas as pl
from jax.experimental.pallas import tpu as pltpu


def _gsr_kernel(w_ref, t_ref, adj_ref, xout_ref):
    hr, lr = w_ref.shape
    bt = t_ref.shape[1] // hr                     # subjects in this batch block

    # One wide, lane-dense MXU pass fuses the first matmul over all subjects
    # of the block:  f_all = | W @ [t_0 | t_1 | ... | t_{bt-1}] |   (hr, bt*hr)
    f_all = jnp.abs(jnp.dot(w_ref[...], t_ref[...],
                            preferred_element_type=jnp.float32))

    # (hr, hr) diagonal mask built ONCE per invocation (no per-subject iota).
    rows = lax.broadcasted_iota(jnp.int32, (hr, hr), 0)
    cols = lax.broadcasted_iota(jnp.int32, (hr, hr), 1)
    eye_b = rows == cols

    adj_parts = []
    x_parts = []
    for b in range(bt):                           # bt is small and static
        fb = f_all[:, b * hr:(b + 1) * hr]        # (hr, hr) static slice
        fb = jnp.where(eye_b, jnp.float32(1.0), fb)   # fill_diagonal_(1)

        # normalize_adj_torch: diag == 1 and |.| elsewhere => rowsum >= 1, so
        # rsqrt is finite (no isinf guard needed); row/col scaling vectors are
        # identical, so compute the reduction once.
        r = lax.rsqrt(jnp.sum(fb, axis=1, keepdims=True))         # (hr, 1)
        adj_b = (fb * r).T * r        # adj[i,j] = r[i] * fb[j,i] * r[j]

        # X_out = adj @ adj.T; a single dot pass gives identical accumulation
        # order for x[i,k] and x[k,i], so (X + X.T)/2 is a no-op and dropped.
        x_b = lax.dot_general(adj_b, adj_b, (((1,), (1,)), ((), ())),
                              preferred_element_type=jnp.float32)
        x_b = jnp.where(eye_b, jnp.float32(1.0), x_b)

        adj_parts.append(adj_b)
        x_parts.append(jnp.abs(x_b))

    # Single lane-dense (hr, bt*hr) store per output.
    adj_ref[...] = adj_parts[0] if bt == 1 else jnp.concatenate(adj_parts, axis=1)
    xout_ref[...] = x_parts[0] if bt == 1 else jnp.concatenate(x_parts, axis=1)


def gsr_layer_batched(A, X, weights, hr_dim, lr_dim):
    """Batched GSRLayer forward.

    A       : (B, lr_dim, lr_dim) symmetric low-res adjacencies
    X       : (B, n, hr_dim) node features (rows zero-padded as in torch module)
    weights : (hr_dim, lr_dim) shared learnable parameter
    Returns (adj, X_out), both (B, hr_dim, hr_dim) float32.
    """
    # The collapsed-chain simplification (and the original torch shapes) need:
    assert lr_dim <= hr_dim <= 2 * lr_dim, "GSRLayer requires lr <= hr <= 2*lr"

    A = A.astype(jnp.float32)
    X = X.astype(jnp.float32)
    weights = weights.astype(jnp.float32)
    B = A.shape[0]

    # --- glue that stays in XLA ---------------------------------------------
    # TODO(synk): the eigendecomposition itself has no Pallas equivalent.
    _eig_val_lr, U_lr = jnp.linalg.eigh(A, UPLO='U')          # (B, lr, lr)

    n = X.shape[-2]
    if n < lr_dim:
        X = jnp.pad(X, ((0, 0), (0, lr_dim - n), (0, 0)))
    f_lr = X[:, :lr_dim, :]                                   # (B, lr, hr)

    # t = U.T @ f_pad[:lr] -- tiny product folded in right next to eigh.
    t = jnp.einsum('bkl,bkh->blh', U_lr, f_lr)                # (B, lr, hr)

    # --- batch-block sizing ---------------------------------------------------
    # Smallest per-subject group making the lane axis a multiple of 128.
    bt_min = 128 // math.gcd(hr_dim, 128)
    units = -(-B // bt_min)
    # Keep >= 2 "parallel" grid steps when possible so dual-TC chips split work.
    nb = 2 if units >= 2 else 1
    # Cap per-block bytes conservatively (v5e scoped-VMEM default is 16 MiB,
    # blocks are double-buffered).
    budget = 6 * 1024 * 1024

    def _blk_bytes(units_per_blk):
        bt = units_per_blk * bt_min
        return 4 * bt * hr_dim * (lr_dim + 2 * hr_dim)

    while -(-units // nb) > 1 and _blk_bytes(-(-units // nb)) > budget:
        nb += 1
    bt_sub = -(-units // nb) * bt_min          # subjects per grid step
    b_pad = nb * bt_sub                        # padded batch

    if b_pad > B:
        t = jnp.pad(t, ((0, b_pad - B), (0, 0), (0, 0)))
    # Lane-dense layout: subject index folded into the lane (last) axis.
    t_wide = jnp.transpose(t, (1, 0, 2)).reshape(lr_dim, b_pad * hr_dim)

    # --- hot path in Pallas: bt_sub subjects per grid step --------------------
    adj_w, x_w = pl.pallas_call(
        _gsr_kernel,
        out_shape=(jax.ShapeDtypeStruct((hr_dim, b_pad * hr_dim), jnp.float32),
                   jax.ShapeDtypeStruct((hr_dim, b_pad * hr_dim), jnp.float32)),
        grid=(nb,),
        in_specs=[
            pl.BlockSpec((hr_dim, lr_dim), lambda g: (0, 0)),           # shared W
            pl.BlockSpec((lr_dim, bt_sub * hr_dim), lambda g: (0, g)),  # block of t
        ],
        out_specs=(
            pl.BlockSpec((hr_dim, bt_sub * hr_dim), lambda g: (0, g)),
            pl.BlockSpec((hr_dim, bt_sub * hr_dim), lambda g: (0, g)),
        ),
        compiler_params=pltpu.CompilerParams(
            dimension_semantics=("parallel",)),   # dual-TC chips split the batch
    )(weights, t_wide)

    # Un-fold the lane-dense slabs back to (B, hr, hr) and drop batch padding.
    adj = adj_w.reshape(hr_dim, b_pad, hr_dim).transpose(1, 0, 2)[:B]
    x_out = x_w.reshape(hr_dim, b_pad, hr_dim).transpose(1, 0, 2)[:B]
    return adj, x_out


def gsr_layer(A, X, weights, hr_dim, lr_dim):
    """Single-subject forward, matching the torch module's signature/semantics."""
    adj, x_out = gsr_layer_batched(A[None], X[None], weights, hr_dim, lr_dim)
    return adj[0], x_out[0]


def _gsr_reference(A, X, weights, hr_dim, lr_dim, U_lr=None):
    """Plain-JAX transcription of the original torch forward (correctness oracle).

    U_lr can be supplied so the comparison is insensitive to eigenvector-sign
    choices between batched and unbatched eigh calls.
    """
    if U_lr is None:
        _, U_lr = jnp.linalg.eigh(A, UPLO='U')
    eye = jnp.eye(lr_dim, dtype=jnp.float32)
    s_d = jnp.concatenate([eye, eye[: hr_dim - lr_dim]], axis=0)
    a = weights @ s_d.T
    pad = hr_dim - lr_dim
    U_pad = jnp.pad(U_lr, ((0, pad), (0, pad)))
    b = a @ U_pad.T
    if X.shape[0] < hr_dim:
        f_p = jnp.pad(X, ((0, hr_dim - X.shape[0]), (0, 0)))
    else:
        f_p = X
    f_d = jnp.abs(b @ f_p)
    diag = jnp.eye(hr_dim, dtype=bool)
    f_d = jnp.where(diag, 1.0, f_d)
    rowsum = f_d.sum(1)
    r = rowsum ** -0.5
    r = jnp.where(jnp.isinf(r), 0.0, r)
    D = jnp.diag(r)
    adj = (f_d @ D).T @ D
    x = adj @ adj.T
    x = (x + x.T) / 2
    x = jnp.where(diag, 1.0, x)
    return adj, jnp.abs(x)


if __name__ == "__main__":
    hr_dim, lr_dim, batch = 32, 16, 8

    key = jax.random.PRNGKey(0)
    k_a, k_x, k_w = jax.random.split(key, 3)

    M = jax.random.normal(k_a, (batch, lr_dim, lr_dim), dtype=jnp.float32)
    A = (M + jnp.swapaxes(M, -1, -2)) * 0.5          # symmetric low-res adjacencies
    X = jax.random.normal(k_x, (batch, lr_dim, hr_dim), dtype=jnp.float32)
    weights = jax.random.normal(k_w, (hr_dim, lr_dim), dtype=jnp.float32)

    # Batched (amortized, lane-dense) and single-subject (module semantics) paths.
    adj_b, x_b = gsr_layer_batched(A, X, weights, hr_dim, lr_dim)
    adj0, x0 = gsr_layer(A[0], X[0], weights, hr_dim, lr_dim)
    jax.block_until_ready((adj_b, x_b, adj0, x0))

    assert adj_b.shape == (batch, hr_dim, hr_dim) and x_b.shape == (batch, hr_dim, hr_dim)
    assert adj0.shape == (hr_dim, hr_dim) and x0.shape == (hr_dim, hr_dim)

    # Verify against a plain-JAX transcription of the original torch forward,
    # sharing the same eigenvectors the wrapper computed (same eigh call shape).
    U_all = jnp.linalg.eigh(A, UPLO='U')[1]
    for b in range(batch):
        ra, rx = _gsr_reference(A[b], X[b], weights, hr_dim, lr_dim, U_lr=U_all[b])
        np.testing.assert_allclose(np.asarray(adj_b[b]), np.asarray(ra),
                                   rtol=1e-2, atol=1e-2)
        np.testing.assert_allclose(np.asarray(x_b[b]), np.asarray(rx),
                                   rtol=1e-2, atol=1e-2)
        # Keep the symmetry assertion (we dropped (X + X.T)/2 in-kernel).
        np.testing.assert_allclose(np.asarray(x_b[b]), np.asarray(x_b[b]).T,
                                   rtol=1e-5, atol=1e-5)

    U_one = jnp.linalg.eigh(A[0][None], UPLO='U')[1][0]
    ra0, rx0 = _gsr_reference(A[0], X[0], weights, hr_dim, lr_dim, U_lr=U_one)
    np.testing.assert_allclose(np.asarray(adj0), np.asarray(ra0), rtol=1e-2, atol=1e-2)
    np.testing.assert_allclose(np.asarray(x0), np.asarray(rx0), rtol=1e-2, atol=1e-2)

    print("KERNEL_OK")
</pallas_src>

<mosaic_0001>
module attributes {stable_mosaic.version = 11 : i64} {
  func.func @_gsr_kernel(%arg0: i32, %arg1: memref<32x16xf32, #tpu.memory_space<vmem>>, %arg2: memref<16x128xf32, #tpu.memory_space<vmem>>, %arg3: memref<32x128xf32, #tpu.memory_space<vmem>>, %arg4: memref<32x128xf32, #tpu.memory_space<vmem>>) attributes {dimension_semantics = [#tpu.dimension_semantics<parallel>], iteration_bounds = array<i64: 2>, scalar_prefetch = 0 : i64, scratch_operands = 0 : i64, tpu.core_type = #tpu.core_type<tc>, window_params = [{pipeline_mode = #tpu.pipeline_mode<synchronous>, transform_indices = @transform_0, window_bounds = array<i64: 32, 16>}, {transform_indices = @transform_1, window_bounds = array<i64: 16, 128>}, {transform_indices = @transform_2, window_bounds = array<i64: 32, 128>}, {transform_indices = @transform_3, window_bounds = array<i64: 32, 128>}]} {
    %c0 = arith.constant 0 : index
    %c0_0 = arith.constant 0 : index
    %0 = vector.load %arg1[%c0, %c0_0] : memref<32x16xf32, #tpu.memory_space<vmem>>, vector<32x16xf32>
    %c0_1 = arith.constant 0 : index
    %c0_2 = arith.constant 0 : index
    %1 = vector.load %arg2[%c0_1, %c0_2] : memref<16x128xf32, #tpu.memory_space<vmem>>, vector<16x128xf32>
    %cst = arith.constant dense<0.000000e+00> : vector<32x128xf32>
    %2 = tpu.matmul %0, %1, %cst {dimension_numbers = #tpu.dot_dimension_numbers<[1], [0], [0], [1], [0, 0, 1, 1], [], []>} : vector<32x16xf32>, vector<16x128xf32>, vector<32x128xf32> -> vector<32x128xf32>
    %3 = math.absf %2 : vector<32x128xf32>
    %4 = tpu.iota {dimensions = array<i32: 0>} : vector<32x32xi32>
    %5 = tpu.iota {dimensions = array<i32: 1>} : vector<32x32xi32>
    %6 = arith.cmpi eq, %4, %5 : vector<32x32xi32>
    %7 = vector.extract_strided_slice %3 {offsets = [0, 0], sizes = [32, 32], strides = [1, 1]} : vector<32x128xf32> to vector<32x32xf32>
    %cst_3 = arith.constant 1.000000e+00 : f32
    %8 = vector.broadcast %cst_3 : f32 to vector<32x32xf32>
    %9 = arith.select %6, %8, %7 : vector<32x32xi1>, vector<32x32xf32>
    %cst_4 = arith.constant dense<0.000000e+00> : vector<32xf32>
    %10 = vector.multi_reduction <add>, %9, %cst_4 [1] : vector<32x32xf32> to vector<32xf32>
    %11 = vector.shape_cast %10 : vector<32xf32> to vector<32x1xf32>
    %12 = math.rsqrt %11 : vector<32x1xf32>
    %13 = vector.broadcast %12 : vector<32x1xf32> to vector<32x32xf32>
    %14 = arith.mulf %9, %13 : vector<32x32xf32>
    %15 = tpu.transpose %14, [1, 0] : vector<32x32xf32> -> vector<32x32xf32>
    %16 = vector.broadcast %12 : vector<32x1xf32> to vector<32x32xf32>
    %17 = arith.mulf %15, %16 : vector<32x32xf32>
    %cst_5 = arith.constant dense<0.000000e+00> : vector<32x32xf32>
    %18 = tpu.matmul %17, %17, %cst_5 {dimension_numbers = #tpu.dot_dimension_numbers<[1], [1], [0], [0], [0, 0, 1, 0], [], []>} : vector<32x32xf32>, vector<32x32xf32>, vector<32x32xf32> -> vector<32x32xf32>
    %cst_6 = arith.constant 1.000000e+00 : f32
    %19 = vector.broadcast %cst_6 : f32 to vector<32x32xf32>
    %20 = arith.select %6, %19, %18 : vector<32x32xi1>, vector<32x32xf32>
    %21 = math.absf %20 : vector<32x32xf32>
    %22 = vector.extract_strided_slice %3 {offsets = [0, 32], sizes = [32, 32], strides = [1, 1]} : vector<32x128xf32> to vector<32x32xf32>
    %cst_7 = arith.constant 1.000000e+00 : f32
    %23 = vector.broadcast %cst_7 : f32 to vector<32x32xf32>
    %24 = arith.select %6, %23, %22 : vector<32x32xi1>, vector<32x32xf32>
    %cst_8 = arith.constant dense<0.000000e+00> : vector<32xf32>
    %25 = vector.multi_reduction <add>, %24, %cst_8 [1] : vector<32x32xf32> to vector<32xf32>
    %26 = vector.shape_cast %25 : vector<32xf32> to vector<32x1xf32>
    %27 = math.rsqrt %26 : vector<32x1xf32>
    %28 = vector.broadcast %27 : vector<32x1xf32> to vector<32x32xf32>
    %29 = arith.mulf %24, %28 : vector<32x32xf32>
    %30 = tpu.transpose %29, [1, 0] : vector<32x32xf32> -> vector<32x32xf32>
    %31 = vector.broadcast %27 : vector<32x1xf32> to vector<32x32xf32>
    %32 = arith.mulf %30, %31 : vector<32x32xf32>
    %cst_9 = arith.constant dense<0.000000e+00> : vector<32x32xf32>
    %33 = tpu.matmul %32, %32, %cst_9 {dimension_numbers = #tpu.dot_dimension_numbers<[1], [1], [0], [0], [0, 0, 1, 0], [], []>} : vector<32x32xf32>, vector<32x32xf32>, vector<32x32xf32> -> vector<32x32xf32>
    %cst_10 = arith.constant 1.000000e+00 : f32
    %34 = vector.broadcast %cst_10 : f32 to vector<32x32xf32>
    %35 = arith.select %6, %34, %33 : vector<32x32xi1>, vector<32x32xf32>
    %36 = math.absf %35 : vector<32x32xf32>
    %37 = vector.extract_strided_slice %3 {offsets = [0, 64], sizes = [32, 32], strides = [1, 1]} : vector<32x128xf32> to vector<32x32xf32>
    %cst_11 = arith.constant 1.000000e+00 : f32
    %38 = vector.broadcast %cst_11 : f32 to vector<32x32xf32>
    %39 = arith.select %6, %38, %37 : vector<32x32xi1>, vector<32x32xf32>
    %cst_12 = arith.constant dense<0.000000e+00> : vector<32xf32>
    %40 = vector.multi_reduction <add>, %39, %cst_12 [1] : vector<32x32xf32> to vector<32xf32>
    %41 = vector.shape_cast %40 : vector<32xf32> to vector<32x1xf32>
    %42 = math.rsqrt %41 : vector<32x1xf32>
    %43 = vector.broadcast %42 : vector<32x1xf32> to vector<32x32xf32>
    %44 = arith.mulf %39, %43 : vector<32x32xf32>
    %45 = tpu.transpose %44, [1, 0] : vector<32x32xf32> -> vector<32x32xf32>
    %46 = vector.broadcast %42 : vector<32x1xf32> to vector<32x32xf32>
    %47 = arith.mulf %45, %46 : vector<32x32xf32>
    %cst_13 = arith.constant dense<0.000000e+00> : vector<32x32xf32>
    %48 = tpu.matmul %47, %47, %cst_13 {dimension_numbers = #tpu.dot_dimension_numbers<[1], [1], [0], [0], [0, 0, 1, 0], [], []>} : vector<32x32xf32>, vector<32x32xf32>, vector<32x32xf32> -> vector<32x32xf32>
    %cst_14 = arith.constant 1.000000e+00 : f32
    %49 = vector.broadcast %cst_14 : f32 to vector<32x32xf32>
    %50 = arith.select %6, %49, %48 : vector<32x32xi1>, vector<32x32xf32>
    %51 = math.absf %50 : vector<32x32xf32>
    %52 = vector.extract_strided_slice %3 {offsets = [0, 96], sizes = [32, 32], strides = [1, 1]} : vector<32x128xf32> to vector<32x32xf32>
    %cst_15 = arith.constant 1.000000e+00 : f32
    %53 = vector.broadcast %cst_15 : f32 to vector<32x32xf32>
    %54 = arith.select %6, %53, %52 : vector<32x32xi1>, vector<32x32xf32>
    %cst_16 = arith.constant dense<0.000000e+00> : vector<32xf32>
    %55 = vector.multi_reduction <add>, %54, %cst_16 [1] : vector<32x32xf32> to vector<32xf32>
    %56 = vector.shape_cast %55 : vector<32xf32> to vector<32x1xf32>
    %57 = math.rsqrt %56 : vector<32x1xf32>
    %58 = vector.broadcast %57 : vector<32x1xf32> to vector<32x32xf32>
    %59 = arith.mulf %54, %58 : vector<32x32xf32>
    %60 = tpu.transpose %59, [1, 0] : vector<32x32xf32> -> vector<32x32xf32>
    %61 = vector.broadcast %57 : vector<32x1xf32> to vector<32x32xf32>
    %62 = arith.mulf %60, %61 : vector<32x32xf32>
    %cst_17 = arith.constant dense<0.000000e+00> : vector<32x32xf32>
    %63 = tpu.matmul %62, %62, %cst_17 {dimension_numbers = #tpu.dot_dimension_numbers<[1], [1], [0], [0], [0, 0, 1, 0], [], []>} : vector<32x32xf32>, vector<32x32xf32>, vector<32x32xf32> -> vector<32x32xf32>
    %cst_18 = arith.constant 1.000000e+00 : f32
    %64 = vector.broadcast %cst_18 : f32 to vector<32x32xf32>
    %65 = arith.select %6, %64, %63 : vector<32x32xi1>, vector<32x32xf32>
    %66 = math.absf %65 : vector<32x32xf32>
    %67 = tpu.concatenate %17, %32, %47, %62 in 1 : vector<32x32xf32>, vector<32x32xf32>, vector<32x32xf32>, vector<32x32xf32> -> vector<32x128xf32>
    %c0_19 = arith.constant 0 : index
    %c0_20 = arith.constant 0 : index
    %68 = vector.load %arg3[%c0_19, %c0_20] : memref<32x128xf32, #tpu.memory_space<vmem>>, vector<32x128xf32>
    tpu.vector_store %arg3[%c0_19, %c0_20], %67 {strides = array<i32>} : memref<32x128xf32, #tpu.memory_space<vmem>>, vector<32x128xf32>,
    %69 = tpu.concatenate %21, %36, %51, %66 in 1 : vector<32x32xf32>, vector<32x32xf32>, vector<32x32xf32>, vector<32x32xf32> -> vector<32x128xf32>
    %c0_21 = arith.constant 0 : index
    %c0_22 = arith.constant 0 : index
    %70 = vector.load %arg4[%c0_21, %c0_22] : memref<32x128xf32, #tpu.memory_space<vmem>>, vector<32x128xf32>
    tpu.vector_store %arg4[%c0_21, %c0_22], %69 {strides = array<i32>} : memref<32x128xf32, #tpu.memory_space<vmem>>, vector<32x128xf32>,
    return
  }
  func.func @transform_0(%arg0: i32) -> (i32, i32) {
    %c0_i32 = arith.constant 0 : i32
    %c0_i32_0 = arith.constant 0 : i32
    %c0_i32_1 = arith.constant 0 : i32
    return %c0_i32, %c0_i32_0 : i32, i32
  }
  func.func @transform_1(%arg0: i32) -> (i32, i32) {
    %c0_i32 = arith.constant 0 : i32
    %c0_i32_0 = arith.constant 0 : i32
    return %c0_i32, %arg0 : i32, i32
  }
  func.func @transform_2(%arg0: i32) -> (i32, i32) {
    %c0_i32 = arith.constant 0 : i32
    %c0_i32_0 = arith.constant 0 : i32
    return %c0_i32, %arg0 : i32, i32
  }
  func.func @transform_3(%arg0: i32) -> (i32, i32) {
    %c0_i32 = arith.constant 0 : i32
    %c0_i32_0 = arith.constant 0 : i32
    return %c0_i32, %arg0 : i32, i32
  }
}

</mosaic_0001>

<bundles_post_ra>
// kernel: tpu_custom_call.1
= control target key start
LH: loop header
LB: loop body
LE: loop exit
PB: predicated region body
PF: predicated region fallthrough
CT: control target
= control target key end

     0   :  { %9 = vsyncpa [#allocation4], 0  ;;  %s1931_s0 = inlined_call_operand.vmem [shape: f32[32,16], index: 0, kind: input, shape index: {}]   ;;  %s1932_s1 = inlined_call_operand.vmem [shape: f32[16,256], index: 1, kind: input, shape index: {}]   ;;  %s1933_s2 = inlined_call_operand.hbm [shape: f32[32,256], index: 2, kind: output, shape index: {0}]   ;;  %s1934_s3 = inlined_call_operand.hbm [shape: f32[32,256], index: 3, kind: output, shape index: {1}]  }
   0x1   :  { %11 = vsyncpa [#allocation4 + $0x1], 0 }
   0x2   :  { %12 = vsyncpa [#allocation6], 0 }
   0x3   :  { %14 = vsyncpa [#allocation6 + $0x1], 0  ;;  %s1416_s12 = smov 0   ;;  %s1418_s13 = smov 0  }
   0x4   :  { %s1420_s14 = smov 0   ;;  %s1422_s15 = smov 0  }
   0x5 LB: > { %s1157_s16 = sadd.s32 4294967295, %s1388_s15   ;;  %s1158_s17 = sadd.s32 4294967294, %s1388_s15   ;;  %s1388_s15 = sphi %s1422_s15, %s1948_s15   ;;  %s1384_s14 = sphi %s1420_s14, %s1947_s14   ;;  %s1380_s13 = sphi %s1418_s13, %s1946_s13   ;;  %s1376_s12 = sphi %s1416_s12, %s1945_s12  }
   0x6   : > { %s1439_s18 = sadd.s32 1, %s1388_s15   ;;  %s48_s19 = sadd.s32 1, %s1384_s14 }
   0x7   : > { %s45_s20 = ssub.s32 %s1388_s15, %s1439_s18  ;;  %p55_p0 = scmp.ne.s32.totalorder %s1384_s14, %s1380_s13 }
   0x8   : > { %p46_p1 = scmp.eq.s32.totalorder %s45_s20, 0  ;;  %p56_p2 = scmp.eq.s32.totalorder %s1388_s15, 0 }
   0x9   : > { %p85_p3 = scmp.eq.s32.totalorder %s1157_s16, 1  ;;  %p90_p4 = scmp.ne.s32.totalorder %s1380_s13, %s1376_s12 }
   0xa   : > { %s1452_s21 = scalar_select %p46_p1, %s1384_s14, %s48_s19  }
   0xb   : > { %p57_p5 = por %p56_p2, %p55_p0  ;;  %p1454_p6 = por %p85_p3, %p55_p0 }
   0xc   : > { %p91_p7 = scmp.eq.s32.totalorder %s1158_s17, 1  ;;  %p1160_p9 = scmp.ge.s32.totalorder %s1388_s15, 2 }
   0xe   : > { %p1458_p8 = por %p91_p7, %p90_p4  ;;  %136 = sbr.rel (%p1160_p9) target bundleno = 25 (0x19), region = 20 }
  0x13   : > { %139 = sbr.rel (!%p57_p5) target bundleno = 25 (0x19), region = 24  ;;  %s141_s24 = sand.u32 (%p57_p5), 1, %s1384_s14  }
  0x14   : > { %s1162_s25 = sshll.u32 (%p57_p5), %s1388_s15, 3  ;;  %s1161_s26 = sshll.u32 (%p57_p5), %s141_s24, 4 }
  0x15   : > { %s145_s29 = scalar_lea.vmem (%p57_p5), %s1932_s1, %s1162_s25  ;;  %s143_s30 = scalar_lea.vmem (%p57_p5), [#allocation2], %s1161_s26 }
  0x16   : > { %v176_v0 = vld [vmem:[%s145_s29] sm:$0xff] (%p57_p5)  ;;  %v178_v1 = vld [vmem:[%s145_s29 + $0x10] sm:$0xff] (%p57_p5) }
  0x17   : > { %177 = vst [vmem:[%s143_s30] sm:$0xff] (%p57_p5), %v176_v0 }
  0x18   : > { %179 = vst [vmem:[%s143_s30 + $0x8] sm:$0xff] %v178_v1 }
  0x19 PF: > { %p1163_p10 = scmp.ge.s32.totalorder %s1388_s15, 1  ;;  %p184_p11 = scmp.lt.s32.totalorder %s1388_s15, 3 }
  0x1b   : > { %p185_p12 = pnand %p1163_p10, %p184_p11 }
  0x1c   : > { %s1473_s4 = sand.u32 (!%p185_p12), 1, %s1380_s13   ;;  %s1390_s24 = smov (!%p185_p12), 64  }
  0x1d   : > { %188 = sbr.rel (%p185_p12) target bundleno = 978 (0x3d2), region = 62  ;;  %s1164_s5 = sshll.u32 (!%p185_p12), %s1473_s4, 4 }
  0x1e   : > { %s193_s6 = scalar_lea.vmem (!%p185_p12), [#allocation2], %s1164_s5  ;;  %s1391_s25 = smov (!%p185_p12), 96  }
  0x1f   : > { %s1392_s26 = smov (!%p185_p12), 32   ;;  %s1165_s27 = sshll.u32 (!%p185_p12), %s1473_s4, 5 }
  0x20   : > { %s1786_s28 = scalar_lea.vmem (!%p185_p12), [#allocation3], %s1165_s27  ;;  %s1828_s30 = sshll.u32 (!%p185_p12), %s1157_s16, 3 }
  0x21   : > { %s1038_s29 = sshll.u32 (!%p185_p12), %s1786_s28, 4  ;;  %s1037_s7 = scalar_lea.hbm (!%p185_p12), %s1933_s2, %s1828_s30  ;;  %s1830_s29 = int_to_ptr.vmem [resolvable:$true] %s1038_s29 }
  0x22   : > { %v224_v2 = vld [vmem:[%s193_s6 + $0x8] sm:$0xff]  ;;  %v223_v3 = vld [vmem:[%s193_s6] sm:$0xff]  ;;  %vm225_vm0 = vcmask 130048   ;;  %v271_v13 = vlaneseq  ;;  %vm286_vm2 = vcmask 261120   ;;  %s1040_s8 = sshll.u32 %s1037_s7, 4  ;;  %s1022_s16 = scalar_lea.sflag [#allocation4], %s1473_s4  ;;  %s1041_s8 = int_to_ptr.hbm [resolvable:$true] %s1040_s8 }
  0x23   : > { %252 = vmatpush.msra.mxu0 %v224_v2  ;;  %v219_v4 = vld [vmem:[%s1931_s0] sm:$0xff]  ;;  %1209 = vmatpush.msra.mxu1 %v224_v2  ;;  %v221_v5 = vld [vmem:[%s1931_s0 + $0x10] sm:$0xff]  ;;  %v220_v6 = vld [vmem:[%s1931_s0 + $0x8] sm:$0xff]  ;;  %s1308_s9 = sshra.s32 %s1041_s8, 4  ;;  %s1314_s19 = scalar_lea.hbm %s1933_s2, 64  ;;  %s1309_s9 = int_to_ptr.hbm [resolvable:$true] %s1308_s9 }
  0x24   : > { %v222_v7 = vld [vmem:[%s1931_s0 + $0x18] sm:$0xff]  ;;  %v272_v15 = vshrl.u32 %v271_v13, 7  ;;  %v277_v16 = vand.u32 127, %v271_v13  ;;  %s1310_s10 = scalar_lea.hbm %s1309_s9, 32  ;;  %p1315_p2 = scmp.lt.s32.totalorder %s1309_s9, %s1933_s2 }
  0x25   : > { %253 = vmatpush.msra.mxu0 %v223_v3  ;;  %1210 = vmatpush.msra.mxu1 %v223_v3  ;;  %p1311_p13 = scmp.ne.s32.totalorder %s1309_s9, %s1310_s10  ;;  %p1316_p3 = scmp.lt.s32.totalorder %s1314_s19, %s1310_s10 }
  0x26   : > { %1167 = vmatmul.msk.f32.vlgmr.msra.gmra.mxu0 %vm225_vm0, %v219_v4  ;;  %1169 = vmatmul.msk.f32.vlgmr.msra.gmra.mxu1 %vm225_vm0, %v221_v5  ;;  %vm1495_vm1 = vcmp.eq.s32.totalorder %v272_v15, %v277_v16  ;;  %v274_v20 = vadd.s32 16, %v272_v15  ;;  %v275_v26 = vadd.s32 24, %v272_v15  ;;  %v273_v28 = vadd.s32 8, %v272_v15 }
  0x27   : > { %p1312_p0 = pnand %p1311_p13, %p1454_p6  ;;  %p1317_p4 = por %p1316_p3, %p1315_p2 }
  0x28   : > { %vm1505_vm3 = vcmp.eq.s32.totalorder %v274_v20, %v277_v16  ;;  %vm1520_vm4 = vcmp.eq.s32.totalorder %v275_v26, %v277_v16  ;;  %vm1528_vm5 = vcmp.eq.s32.totalorder %v273_v28, %v277_v16 }
  0x29   : > { %p1313_p1 = pneg %p1312_p0 }
  0x2b   : > { %p1318_p5 = pnand %p1317_p4, %p1313_p1 }
  0x2e   : > { %1168 = vmatmul.msk.f32.gmra.mxu0 %vm225_vm0, %v220_v6  ;;  %1170 = vmatmul.msk.f32.gmra.mxu1 %vm225_vm0, %v222_v7 }
  0xa3   : > { %v255_v8 = vpop.f32.mrf.mxu0  ;;  %v261_v10 = vpop.f32.mrf.mxu1 }
  0xa4   : > { %v267_v9 = vand.u32 2147483647, %v255_v8  ;;  %v269_v11 = vand.u32 2147483647, %v261_v10 }
  0xa6   : > { %589 = vrot.lane.b32.xlu1 %v267_v9, %s1390_s24  ;;  %432 = vrot.lane.b32.xlu0 %v267_v9, %s1391_s25  ;;  %v1501_v18 = vsel %vm1495_vm1, 1.0, %v267_v9  ;;  %v1511_v22 = vsel %vm1505_vm3, 1.0, %v269_v11 }
  0xa7   : > { %v287_v19 = vsel %vm286_vm2, %v1501_v18, 0.0  ;;  %v293_v23 = vsel %vm286_vm2, %v1511_v22, 0.0 }
  0xab   : > { %v258_v12 = vpop.f32.mrf.mxu0  ;;  %v264_v24 = vpop.f32.mrf.mxu1 }
  0xac   : > { %v268_v14 = vand.u32 2147483647, %v258_v12  ;;  %v270_v25 = vand.u32 2147483647, %v264_v24 }
  0xae   : > { %436 = vrot.lane.b32.xlu1 %v269_v11, %s1391_s25  ;;  %593 = vrot.lane.b32.xlu0 %v269_v11, %s1390_s24  ;;  %v1526_v30 = vsel %vm1520_vm4, 1.0, %v270_v25  ;;  %v1536_v33 = vsel %vm1528_vm5, 1.0, %v268_v14 }
  0xaf   : > { %434 = vrot.lane.b32.xlu2 %v268_v14, %s1391_s25  ;;  %v296_v32 = vsel %vm286_vm2, %v1526_v30, 0.0  ;;  %v290_v36 = vsel %vm286_vm2, %v1536_v33, 0.0 }
  0xb6   : > { %746 = vrot.lane.b32.xlu1 %v267_v9, %s1392_s26 }
  0xbe   : > { %750 = vrot.lane.b32.xlu1 %v269_v11, %s1392_s26 }
  0xd8   : > { %288 = vadd.xlane.f32.xlu0 %v287_v19 }
  0xe8   : > { %294 = vadd.xlane.f32.xlu1 %v293_v23 }
  0xec   : > { %591 = vrot.lane.b32.xlu0 %v268_v14, %s1390_s24 }
  0xf4   : > { %438 = vrot.lane.b32.xlu0 %v270_v25, %s1391_s25 }
  0xfc   : > { %748 = vrot.lane.b32.xlu0 %v268_v14, %s1392_s26 }
 0x101   : > { %595 = vrot.lane.b32.xlu1 %v270_v25, %s1390_s24 }
 0x104   : > { %752 = vrot.lane.b32.xlu0 %v270_v25, %s1392_s26 }
 0x109   : > { %v435_v51 = vpop.permute.xlu2 %434 }
 0x10a   : > { %v1578_v53 = vsel %vm1528_vm5, 1.0, %v435_v51 }
 0x10b   : > { %v451_v54 = vsel %vm286_vm2, %v1578_v53, 0.0 }
 0x118   : > { %v590_v27 = vpop.permute.xlu1 %589  ;;  %v433_v35 = vpop.permute.xlu0 %432 }
 0x119   : > { %v1542_v37 = vsel %vm1495_vm1, 1.0, %v433_v35  ;;  %v1546_v38 = vsel %vm1495_vm1, 1.0, %v590_v27 }
 0x11a   : > { %v448_v39 = vsel %vm286_vm2, %v1542_v37, 0.0  ;;  %v605_v41 = vsel %vm286_vm2, %v1546_v38, 0.0 }
 0x120   : > { %v437_v34 = vpop.permute.xlu1 %436  ;;  %v594_v43 = vpop.permute.xlu0 %593 }
 0x121   : > { %v1554_v42 = vsel %vm1505_vm3, 1.0, %v437_v34  ;;  %v1558_v44 = vsel %vm1505_vm3, 1.0, %v594_v43 }
 0x122   : > { %v454_v45 = vsel %vm286_vm2, %v1554_v42, 0.0  ;;  %v611_v46 = vsel %vm286_vm2, %v1558_v44, 0.0 }
 0x128   : > { %v747_v40 = vpop.permute.xlu1 %746 }
 0x129   : > { %v1566_v47 = vsel %vm1495_vm1, 1.0, %v747_v40 }
 0x12a   : > { %v762_v50 = vsel %vm286_vm2, %v1566_v47, 0.0 }
 0x12b   : > { %297 = vadd.xlane.f32.xlu1 %v296_v32 }
 0x12e   : > { %291 = vadd.xlane.f32.xlu0 %v290_v36 }
 0x130   : > { %v751_v48 = vpop.permute.xlu1 %750 }
 0x131   : > { %v1570_v49 = vsel %vm1505_vm3, 1.0, %v751_v48 }
 0x132   : > { %v768_v52 = vsel %vm286_vm2, %v1570_v49, 0.0 }
 0x133   : > { %449 = vadd.xlane.f32.xlu1 %v448_v39 }
 0x136   : > { %606 = vadd.xlane.f32.xlu0 %v605_v41 }
 0x13b   : > { %455 = vadd.xlane.f32.xlu1 %v454_v45 }
 0x13e   : > { %612 = vadd.xlane.f32.xlu0 %v611_v46 }
 0x143   : > { %763 = vadd.xlane.f32.xlu1 %v762_v50 }
 0x146   : > { %769 = vadd.xlane.f32.xlu0 %v768_v52 }
 0x14b   : > { %452 = vadd.xlane.f32.xlu1 %v451_v54  ;;  %v289_v55 = vpop.xlane.xlu0 %288 }
 0x14c   : > { %1262 = vrsqrt.f32 %v289_v55  ;;  %vm305_vm7 = vweird.f32 %v289_v55 }
 0x152   : > { %v1263_v8 = vpop.eup %1262 }
 0x153   : > { %v300_v9 = vmul.f32 %v1263_v8, %v289_v55  ;;  %vm306_vm6 = vweird.f32 %v1263_v8 }
 0x154   : > { %vm307_vm8 = vmor %vm305_vm7, %vm306_vm6 }
 0x155   : > { %v301_v10 = vmul.f32 %v1263_v8, %v300_v9 }
 0x157   : > { %v302_v11 = vmul.f32 0.5, %v301_v10 }
 0x159   : > { %v303_v12 = vsub.f32 1.5, %v302_v11 }
 0x15b   : > { %v1594_v62 = vpop.xlane.xlu1 %294  ;;  %v304_v13 = vmul.f32 %v1263_v8, %v303_v12 }
 0x15c   : > { %1264 = vrsqrt.f32 %v1594_v62  ;;  %vm325_vm14 = vweird.f32 %v1594_v62 }
 0x15d   : > { %v1614_v14 = vsel %vm307_vm8, %v1263_v8, %v304_v13 }
 0x15e   : > { %v592_v56 = vpop.permute.xlu0 %591  ;;  %v339_v15 = vmul.f32 %v1614_v14, %v1501_v18 }
 0x15f   : > { %v1584_v57 = vsel %vm1528_vm5, 1.0, %v592_v56 }
 0x160   : > { %v608_v58 = vsel %vm286_vm2, %v1584_v57, 0.0 }
 0x161   : > { %609 = vadd.xlane.f32.xlu0 %v608_v58 }
 0x162   : > { %v1265_v19 = vpop.eup %1264 }
 0x163   : > { %v320_v23 = vmul.f32 %v1265_v19, %v1594_v62  ;;  %vm326_vm12 = vweird.f32 %v1265_v19 }
 0x164   : > { %vm327_vm15 = vmor %vm325_vm14, %vm326_vm12 }
 0x165   : > { %v321_v26 = vmul.f32 %v1265_v19, %v320_v23 }
 0x166   : > { %v439_v59 = vpop.permute.xlu0 %438 }
 0x167   : > { %v1590_v60 = vsel %vm1520_vm4, 1.0, %v439_v59  ;;  %v322_v34 = vmul.f32 0.5, %v321_v26 }
 0x168   : > { %v457_v61 = vsel %vm286_vm2, %v1590_v60, 0.0 }
 0x169   : > { %458 = vadd.xlane.f32.xlu0 %v457_v61  ;;  %v323_v46 = vsub.f32 1.5, %v322_v34 }
 0x16b   : > { %v324_v58 = vmul.f32 %v1265_v19, %v323_v46 }
 0x16d   : > { %v1637_v8 = vsel %vm327_vm15, %v1265_v19, %v324_v58 }
 0x16e   : > { %v749_v63 = vpop.permute.xlu0 %748  ;;  %v341_v11 = vmul.f32 %v1637_v8, %v1511_v22 }
 0x16f   : > { %v1598_v0 = vsel %vm1528_vm5, 1.0, %v749_v63 }
 0x170   : > { %v765_v1 = vsel %vm286_vm2, %v1598_v0, 0.0 }
 0x171   : > { %766 = vadd.xlane.f32.xlu1 %v765_v1 }
 0x173   : > { %v596_v2 = vpop.permute.xlu1 %595 }
 0x174   : > { %v1604_v3 = vsel %vm1520_vm4, 1.0, %v596_v2 }
 0x175   : > { %v614_v4 = vsel %vm286_vm2, %v1604_v3, 0.0 }
 0x176   : > { %v753_v5 = vpop.permute.xlu0 %752  ;;  %615 = vadd.xlane.f32.xlu2 %v614_v4 }
 0x177   : > { %v1610_v6 = vsel %vm1520_vm4, 1.0, %v753_v5 }
 0x178   : > { %v771_v7 = vsel %vm286_vm2, %v1610_v6, 0.0 }
 0x179   : > { %772 = vadd.xlane.f32.xlu1 %v771_v7 }
 0x19e   : > { %v1619_v16 = vpop.xlane.xlu1 %297 }
 0x19f   : > { %343 = vxpose.xlu2.b32.start [1/4] (short) (narrow) %v339_v15, 32 }
 0x1a1   : > { %v292_v20 = vpop.xlane.xlu0 %291 }
 0x1a2   : > { %1266 = vrsqrt.f32 %v292_v20  ;;  %vm315_vm10 = vweird.f32 %v292_v20 }
 0x1a3   : > { %1268 = vrsqrt.f32 %v1619_v16 }
 0x1a6   : > { %v450_v24 = vpop.xlane.xlu1 %449 }
 0x1a7   : > { %1270 = vrsqrt.f32 %v450_v24  ;;  %vm466_vm0 = vweird.f32 %v450_v24 }
 0x1a8   : > { %v1267_v25 = vpop.eup %1266 }
 0x1a9   : > { %v310_v27 = vmul.f32 %v1267_v25, %v292_v20  ;;  %v607_v28 = vpop.xlane.xlu0 %606  ;;  %v1623_v32 = vpop.eup %1268  ;;  %vm316_vm9 = vweird.f32 %v1267_v25 }
 0x1aa   : > { %1272 = vrsqrt.f32 %v607_v28  ;;  %v330_v36 = vmul.f32 %v1623_v32, %v1619_v16  ;;  %vm317_vm11 = vmor %vm315_vm10, %vm316_vm9  ;;  %vm623_vm8 = vweird.f32 %v607_v28  ;;  %vm336_vm10 = vweird.f32 %v1623_v32 }
 0x1ab   : > { %v311_v18 = vmul.f32 %v1267_v25, %v310_v27 }
 0x1ac   : > { %v331_v50 = vmul.f32 %v1623_v32, %v330_v36 }
 0x1ad   : > { %v1271_v35 = vpop.eup %1270  ;;  %v312_v39 = vmul.f32 0.5, %v311_v18 }
 0x1ae   : > { %v461_v40 = vmul.f32 %v1271_v35, %v450_v24  ;;  %v1627_v41 = vpop.xlane.xlu1 %455  ;;  %vm467_vm13 = vweird.f32 %v1271_v35  ;;  %v332_v63 = vmul.f32 0.5, %v331_v50 }
 0x1af   : > { %v313_v43 = vsub.f32 1.5, %v312_v39  ;;  %vm468_vm6 = vmor %vm466_vm0, %vm467_vm13 }
 0x1b0   : > { %v1273_v45 = vpop.eup %1272  ;;  %v462_v48 = vmul.f32 %v1271_v35, %v461_v40  ;;  %v333_v9 = vsub.f32 1.5, %v332_v63 }
 0x1b1   : > { %v314_v51 = vmul.f32 %v1267_v25, %v313_v43  ;;  %v618_v52 = vmul.f32 %v1273_v45, %v607_v28  ;;  %vm624_vm7 = vweird.f32 %v1273_v45  ;;  %v1655_v24 = vpop.xlane.xlu0 %612 }
 0x1b2   : > { %v463_v54 = vmul.f32 0.5, %v462_v48  ;;  %vm625_vm9 = vmor %vm623_vm8, %vm624_vm7  ;;  %v334_v15 = vmul.f32 %v1623_v32, %v333_v9 }
 0x1b3   : > { %v619_v55 = vmul.f32 %v1273_v45, %v618_v52  ;;  %v1630_v56 = vsel %vm317_vm11, %v1267_v25, %v314_v51  ;;  %vm335_vm11 = vweird.f32 %v1619_v16 }
 0x1b4   : > { %v464_v59 = vsub.f32 1.5, %v463_v54  ;;  %v340_v61 = vmul.f32 %v1630_v56, %v1536_v33  ;;  %vm337_vm12 = vmor %vm335_vm11, %vm336_vm10 }
 0x1b5   : > { %v620_v1 = vmul.f32 0.5, %v619_v55  ;;  %v1652_v22 = vsel %vm337_vm12, %v1623_v32, %v334_v15 }
 0x1b6   : > { %v764_v2 = vpop.xlane.xlu1 %763  ;;  %344 = vxpose.xlu2.b32.cont [2/4] (short) (narrow) %v340_v61, 32  ;;  %v465_v4 = vmul.f32 %v1271_v35, %v464_v59  ;;  %v342_v27 = vmul.f32 %v1652_v22, %v1526_v30 }
 0x1b7   : > { %v621_v5 = vsub.f32 1.5, %v620_v1  ;;  %1274 = vrsqrt.f32 %v764_v2  ;;  %vm780_vm14 = vweird.f32 %v764_v2 }
 0x1b8   : > { %v1635_v7 = vsel %vm468_vm6, %v1271_v35, %v465_v4  ;;  %1276 = vrsqrt.f32 %v1627_v41 }
 0x1b9   : > { %v500_v33 = vmul.f32 %v1635_v7, %v1542_v37  ;;  %v622_v62 = vmul.f32 %v1273_v45, %v621_v5  ;;  %v1661_v40 = vpop.xlane.xlu0 %769 }
 0x1bb   : > { %504 = vxpose.xlu0.b32.start [1/4] (short) (narrow) %v500_v33, 32  ;;  %v1642_v10 = vsel %vm625_vm9, %v1273_v45, %v622_v62  ;;  %vm486_vm9 = vweird.f32 %v1627_v41 }
 0x1bc   : > { %v657_v12 = vmul.f32 %v1642_v10, %v1546_v38 }
 0x1bd   : > { %v1275_v13 = vpop.eup %1274 }
 0x1be   : > { %v775_v19 = vmul.f32 %v1275_v13, %v764_v2  ;;  %v453_v20 = vpop.xlane.xlu1 %452  ;;  %345 = vxpose.xlu2.b32.cont [3/4] (short) (narrow) %v341_v11, 32  ;;  %661 = vxpose.xlu1.b32.start [1/4] (short) (narrow) %v657_v12, 32  ;;  %v1277_v37 = vpop.eup %1276  ;;  %vm781_vm13 = vweird.f32 %v1275_v13 }
 0x1bf   : > { %1278 = vrsqrt.f32 %v453_v20  ;;  %v481_v38 = vmul.f32 %v1277_v37, %v1627_v41  ;;  %vm782_vm15 = vmor %vm780_vm14, %vm781_vm13  ;;  %vm476_vm6 = vweird.f32 %v453_v20  ;;  %vm487_vm8 = vweird.f32 %v1277_v37 }
 0x1c0   : > { %v776_v23 = vmul.f32 %v1275_v13, %v775_v19  ;;  %1280 = vrsqrt.f32 %v1655_v24  ;;  %vm488_vm10 = vmor %vm486_vm9, %vm487_vm8 }
 0x1c1   : > { %v482_v18 = vmul.f32 %v1277_v37, %v481_v38 }
 0x1c2   : > { %v777_v25 = vmul.f32 0.5, %v776_v23 }
 0x1c3   : > { %v483_v36 = vmul.f32 0.5, %v482_v18 }
 0x1c4   : > { %v778_v26 = vsub.f32 1.5, %v777_v25 }
 0x1c5   : > { %v1279_v28 = vpop.eup %1278  ;;  %v484_v45 = vsub.f32 1.5, %v483_v36 }
 0x1c6   : > { %v471_v34 = vmul.f32 %v1279_v28, %v453_v20  ;;  %346 = vxpose.xlu2.b32.end [4/4] (short) (narrow) %v342_v27, 32  ;;  %v779_v16 = vmul.f32 %v1275_v13, %v778_v26  ;;  %vm477_vm0 = vweird.f32 %v1279_v28  ;;  %v1281_v54 = vpop.eup %1280 }
 0x1c7   : > { %vm478_vm7 = vmor %vm476_vm6, %vm477_vm0  ;;  %v485_v51 = vmul.f32 %v1277_v37, %v484_v45  ;;  %v638_v55 = vmul.f32 %v1281_v54, %v1655_v24  ;;  %vm644_vm14 = vweird.f32 %v1281_v54 }
 0x1c8   : > { %v472_v35 = vmul.f32 %v1279_v28, %v471_v34  ;;  %v1659_v32 = vsel %vm782_vm15, %v1275_v13, %v779_v16  ;;  %vm643_vm15 = vweird.f32 %v1655_v24 }
 0x1c9   : > { %v814_v30 = vmul.f32 %v1659_v32, %v1566_v47  ;;  %v1671_v47 = vsel %vm488_vm10, %v1277_v37, %v485_v51  ;;  %v639_v61 = vmul.f32 %v1281_v54, %v638_v55 }
 0x1ca   : > { %v473_v39 = vmul.f32 0.5, %v472_v35  ;;  %v502_v58 = vmul.f32 %v1671_v47, %v1554_v42 }
 0x1cb   : > { %v640_v41 = vmul.f32 0.5, %v639_v61 }
 0x1cc   : > { %v474_v43 = vsub.f32 1.5, %v473_v39 }
 0x1cd   : > { %v641_v9 = vsub.f32 1.5, %v640_v41 }
 0x1ce   : > { %v475_v46 = vmul.f32 %v1279_v28, %v474_v43  ;;  %818 = vxpose.xlu2.b32.start [1/4] (short) (narrow) %v814_v30, 32 }
 0x1cf   : > { %v642_v19 = vmul.f32 %v1281_v54, %v641_v9 }
 0x1d0   : > { %v1666_v48 = vsel %vm478_vm7, %v1279_v28, %v475_v46  ;;  %vm645_vm7 = vmor %vm643_vm15, %vm644_vm14  ;;  %vm800_vm15 = vweird.f32 %v1661_v40 }
 0x1d1   : > { %v501_v50 = vmul.f32 %v1666_v48, %v1578_v53  ;;  %v1687_v18 = vsel %vm645_vm7, %v1281_v54, %v642_v19 }
 0x1d2   : > { %v659_v24 = vmul.f32 %v1687_v18, %v1558_v44 }
 0x1d3   : > { %505 = vxpose.xlu0.b32.cont [2/4] (short) (narrow) %v501_v50, 32 }
 0x1d4   : > { %v610_v52 = vpop.xlane.xlu0 %609 }
 0x1d5   : > { %1282 = vrsqrt.f32 %v610_v52  ;;  %vm633_vm12 = vweird.f32 %v610_v52 }
 0x1db   : > { %v1283_v59 = vpop.eup %1282  ;;  %506 = vxpose.xlu0.b32.cont [3/4] (short) (narrow) %v502_v58, 32 }
 0x1dc   : > { %v628_v53 = vmul.f32 %v1283_v59, %v610_v52  ;;  %v459_v63 = vpop.xlane.xlu0 %458  ;;  %vm634_vm11 = vweird.f32 %v1283_v59 }
 0x1dd   : > { %1284 = vrsqrt.f32 %v459_v63  ;;  %vm635_vm13 = vmor %vm633_vm12, %vm634_vm11  ;;  %vm496_vm0 = vweird.f32 %v459_v63 }
 0x1de   : > { %v629_v1 = vmul.f32 %v1283_v59, %v628_v53  ;;  %1286 = vrsqrt.f32 %v1661_v40 }
 0x1e0   : > { %v630_v2 = vmul.f32 0.5, %v629_v1 }
 0x1e2   : > { %v631_v4 = vsub.f32 1.5, %v630_v2 }
 0x1e3   : > { %v1285_v5 = vpop.eup %1284 }
 0x1e4   : > { %v632_v33 = vmul.f32 %v1283_v59, %v631_v4  ;;  %v491_v62 = vmul.f32 %v1285_v5, %v459_v63  ;;  %v767_v11 = vpop.xlane.xlu1 %766  ;;  %v1677_v42 = vpop.eup %1286  ;;  %vm497_vm6 = vweird.f32 %v1285_v5 }
 0x1e5   : > { %1288 = vrsqrt.f32 %v767_v11  ;;  %v795_v20 = vmul.f32 %v1677_v42, %v1661_v40  ;;  %vm498_vm8 = vmor %vm496_vm0, %vm497_vm6  ;;  %vm790_vm10 = vweird.f32 %v767_v11 }
 0x1e6   : > { %v492_v12 = vmul.f32 %v1285_v5, %v491_v62  ;;  %v1679_v13 = vsel %vm635_vm13, %v1283_v59, %v632_v33  ;;  %vm801_vm13 = vweird.f32 %v1677_v42 }
 0x1e7   : > { %v658_v15 = vmul.f32 %v1679_v13, %v1584_v57  ;;  %v796_v26 = vmul.f32 %v1677_v42, %v795_v20  ;;  %vm802_vm6 = vmor %vm800_vm15, %vm801_vm13 }
 0x1e8   : > { %v493_v37 = vmul.f32 0.5, %v492_v12 }
 0x1e9   : > { %v616_v23 = vpop.xlane.xlu2 %615  ;;  %662 = vxpose.xlu1.b32.cont [2/4] (short) (narrow) %v658_v15, 32  ;;  %v797_v39 = vmul.f32 0.5, %v796_v26 }
 0x1ea   : > { %v494_v38 = vsub.f32 1.5, %v493_v37  ;;  %1290 = vrsqrt.f32 %v616_v23  ;;  %vm653_vm14 = vweird.f32 %v616_v23 }
 0x1eb   : > { %v1289_v25 = vpop.eup %1288  ;;  %v798_v51 = vsub.f32 1.5, %v797_v39 }
 0x1ec   : > { %v495_v27 = vmul.f32 %v1285_v5, %v494_v38  ;;  %v785_v57 = vmul.f32 %v1289_v25, %v767_v11  ;;  %v773_v28 = vpop.xlane.xlu1 %772  ;;  %vm791_vm9 = vweird.f32 %v1289_v25 }
 0x1ed   : > { %1292 = vrsqrt.f32 %v773_v28  ;;  %vm792_vm11 = vmor %vm790_vm10, %vm791_vm9  ;;  %v799_v61 = vmul.f32 %v1677_v42, %v798_v51  ;;  %vm943_vm10 = vcmask 523264  }
 0x1ee   : > { %v786_v34 = vmul.f32 %v1289_v25, %v785_v57  ;;  %v1689_v16 = vsel %vm498_vm8, %v1285_v5, %v495_v27  ;;  %vm810_vm8 = vweird.f32 %v773_v28 }
 0x1ef   : > { %v503_v35 = vmul.f32 %v1689_v16, %v1590_v60 }
 0x1f0   : > { %v1291_v36 = vpop.eup %1290  ;;  %v787_v43 = vmul.f32 0.5, %v786_v34 }
 0x1f1   : > { %v648_v30 = vmul.f32 %v1291_v36, %v616_v23  ;;  %663 = vxpose.xlu1.b32.cont [3/4] (short) (narrow) %v659_v24, 32  ;;  %507 = vxpose.xlu0.b32.end [4/4] (short) (narrow) %v503_v35, 32  ;;  %vm654_vm12 = vweird.f32 %v1291_v36 }
 0x1f2   : > { %v788_v45 = vsub.f32 1.5, %v787_v43  ;;  %vm655_vm0 = vmor %vm653_vm14, %vm654_vm12 }
 0x1f3   : > { %v1293_v46 = vpop.eup %1292  ;;  %v649_v50 = vmul.f32 %v1291_v36, %v648_v30 }
 0x1f4   : > { %v789_v52 = vmul.f32 %v1289_v25, %v788_v45  ;;  %v805_v54 = vmul.f32 %v1293_v46, %v773_v28  ;;  %vm811_vm7 = vweird.f32 %v1293_v46 }
 0x1f5   : > { %v650_v55 = vmul.f32 0.5, %v649_v50  ;;  %vm812_vm9 = vmor %vm810_vm8, %vm811_vm7 }
 0x1f6   : > { %v806_v44 = vmul.f32 %v1293_v46, %v805_v54  ;;  %v793_v58 = vsel %vm792_vm11, %v1289_v25, %v789_v52  ;;  %vm948_vm11 = vcmask 785408  }
 0x1f7   : > { %v651_v59 = vsub.f32 1.5, %v650_v55  ;;  %v815_v60 = vmul.f32 %v793_v58, %v1598_v0  ;;  %v803_v0 = vsel %vm802_vm6, %v1677_v42, %v799_v61 }
 0x1f8   : > { %v807_v53 = vmul.f32 0.5, %v806_v44  ;;  %v816_v4 = vmul.f32 %v803_v0, %v1570_v49 }
 0x1f9   : > { %v652_v63 = vmul.f32 %v1291_v36, %v651_v59  ;;  %819 = vxpose.xlu2.b32.cont [2/4] (short) (narrow) %v815_v60, 32 }
 0x1fa   : > { %v808_v41 = vsub.f32 1.5, %v807_v53 }
 0x1fb   : > { %v1699_v1 = vsel %vm655_vm0, %v1291_v36, %v652_v63 }
 0x1fc   : > { %v660_v2 = vmul.f32 %v1699_v1, %v1604_v3  ;;  %v809_v5 = vmul.f32 %v1293_v46, %v808_v41 }
 0x1fe   : > { %664 = vxpose.xlu1.b32.end [4/4] (short) (narrow) %v660_v2, 32  ;;  %v813_v9 = vsel %vm812_vm9, %v1293_v46, %v809_v5 }
 0x1ff   : > { %v817_v40 = vmul.f32 %v813_v9, %v1610_v6 }
 0x201   : > { %820 = vxpose.xlu2.b32.cont [3/4] (short) (narrow) %v816_v4, 32 }
 0x209   : > { %821 = vxpose.xlu2.b32.end [4/4] (short) (narrow) %v817_v40, 32 }
 0x247   : > { %v359_v33 = vpop.trf.xlu2 }
 0x248   : > { %v1722_v6 = vmul.f32 %v359_v33, %v1614_v14 }
 0x24f   : > { %v360_v62 = vpop.trf.xlu2 }
 0x250   : > { %v1717_v42 = vmul.f32 %v360_v62, %v1630_v56 }
 0x257   : > { %v361_v11 = vpop.trf.xlu2 }
 0x258   : > { %v1712_v49 = vmul.f32 %v361_v11, %v1637_v8 }
 0x25f   : > { %v362_v12 = vpop.trf.xlu2 }
 0x260   : > { %v1707_v3 = vmul.f32 %v362_v12, %v1652_v22 }
 0x262   : > { %1171 = vmatpush.xpose.msk.msrb.mxu1 %vm286_vm2, %v1707_v3 }
 0x266   : > { %1172 = vmatpush.xpose.msk.msrb.mxu1 %vm286_vm2, %v1712_v49 }
 0x26a   : > { %1173 = vmatpush.xpose.msk.msrb.mxu1 %vm286_vm2, %v1717_v42 }
 0x26e   : > { %1174 = vmatpush.xpose.msk.msrb.mxu1 %vm286_vm2, %v1722_v6 }
 0x271   : > { %1175 = vmatmul.msk.f32.vlgmr.msrb.gmra.mxu1 %vm286_vm2, %v1722_v6 }
 0x279   : > { %1176 = vmatmul.msk.f32.gmra.mxu1 %vm286_vm2, %v1717_v42 }
 0x27d   : > { %v520_v8 = vpop.trf.xlu0 }
 0x27e   : > { %v536_v22 = vmul.f32 %v520_v8, %v1635_v7 }
 0x280   : > { %903 = vrot.lane.b32.xlu0 %v536_v22, %s1392_s26 }
 0x281   : > { %1177 = vmatmul.msk.f32.gmra.mxu1 %vm286_vm2, %v1712_v49 }
 0x285   : > { %v521_v56 = vpop.trf.xlu0 }
 0x289   : > { %1178 = vmatmul.msk.f32.gmra.mxu1 %vm286_vm2, %v1707_v3 }
 0x28a   : > { %v834_v14 = vpop.trf.xlu2  ;;  %v677_v15 = vpop.trf.xlu1 }
 0x28b   : > { %v693_v19 = vmul.f32 %v677_v15, %v1642_v10  ;;  %v850_v7 = vmul.f32 %v834_v14, %v1659_v32  ;;  %v537_v32 = vmul.f32 %v521_v56, %v1666_v48 }
 0x28d   : > { %915 = vrot.lane.b32.xlu1 %v693_v19, %s1390_s24  ;;  %v522_v20 = vpop.trf.xlu0 }
 0x28e   : > { %v538_v10 = vmul.f32 %v522_v20, %v1671_v47 }
 0x292   : > { %v835_v37 = vpop.trf.xlu2  ;;  %v678_v23 = vpop.trf.xlu1 }
 0x293   : > { %v851_v38 = vmul.f32 %v835_v37, %v793_v58  ;;  %v694_v25 = vmul.f32 %v678_v23, %v1679_v13 }
 0x295   : > { %929 = vrot.lane.b32.xlu2 %v851_v38, %s1391_s25  ;;  %927 = vrot.lane.b32.xlu1 %v850_v7, %s1391_s25  ;;  %v523_v26 = vpop.trf.xlu0 }
 0x296   : > { %917 = vrot.lane.b32.xlu0 %v694_v25, %s1390_s24  ;;  %v539_v27 = vmul.f32 %v523_v26, %v1689_v16 }
 0x298   : > { %1179 = vmatpush.xpose.msk.msra.mxu2 %vm286_vm2, %v539_v27 }
 0x29a   : > { %v836_v57 = vpop.trf.xlu2  ;;  %v679_v28 = vpop.trf.xlu1 }
 0x29b   : > { %v852_v34 = vmul.f32 %v836_v57, %v803_v0  ;;  %v695_v35 = vmul.f32 %v679_v28, %v1687_v18 }
 0x29c   : > { %1180 = vmatpush.xpose.msk.msra.mxu2 %vm286_vm2, %v538_v10 }
 0x29d   : > { %905 = vrot.lane.b32.xlu1 %v537_v32, %s1392_s26  ;;  %907 = vrot.lane.b32.xlu2 %v538_v10, %s1392_s26 }
 0x29e   : > { %931 = vrot.lane.b32.xlu0 %v852_v34, %s1391_s25 }
 0x2a0   : > { %1181 = vmatpush.xpose.msk.msra.mxu2 %vm286_vm2, %v537_v32 }
 0x2a2   : > { %v837_v13 = vpop.trf.xlu2  ;;  %v680_v16 = vpop.trf.xlu1 }
 0x2a3   : > { %v853_v24 = vmul.f32 %v837_v13, %v813_v9  ;;  %v696_v47 = vmul.f32 %v680_v16, %v1699_v1 }
 0x2a4   : > { %1182 = vmatpush.xpose.msk.msra.mxu2 %vm286_vm2, %v536_v22 }
 0x2a5   : > { %1187 = vmatpush.xpose.msk.msra.mxu3 %vm286_vm2, %v696_v47  ;;  %1195 = vmatpush.xpose.msk.msrb.mxu0 %vm286_vm2, %v853_v24 }
 0x2a6   : > { %919 = vrot.lane.b32.xlu1 %v695_v35, %s1390_s24  ;;  %909 = vrot.lane.b32.xlu0 %v539_v27, %s1392_s26 }
 0x2a7   : > { %1183 = vmatmul.msk.f32.vlgmr.msra.gmra.mxu2 %vm286_vm2, %v536_v22 }
 0x2a9   : > { %1188 = vmatpush.xpose.msk.msra.mxu3 %vm286_vm2, %v695_v35  ;;  %1196 = vmatpush.xpose.msk.msrb.mxu0 %vm286_vm2, %v852_v34 }
 0x2ad   : > { %1189 = vmatpush.xpose.msk.msra.mxu3 %vm286_vm2, %v694_v25  ;;  %1197 = vmatpush.xpose.msk.msrb.mxu0 %vm286_vm2, %v851_v38 }
 0x2ae   : > { %933 = vrot.lane.b32.xlu1 %v853_v24, %s1391_s25  ;;  %921 = vrot.lane.b32.xlu0 %v696_v47, %s1390_s24 }
 0x2af   : > { %1184 = vmatmul.msk.f32.gmra.mxu2 %vm286_vm2, %v537_v32 }
 0x2b1   : > { %1190 = vmatpush.xpose.msk.msra.mxu3 %vm286_vm2, %v693_v19  ;;  %1198 = vmatpush.xpose.msk.msrb.mxu0 %vm286_vm2, %v850_v7 }
 0x2b4   : > { %1191 = vmatmul.msk.f32.vlgmr.msra.gmra.mxu3 %vm286_vm2, %v693_v19  ;;  %1199 = vmatmul.msk.f32.vlgmr.msrb.gmra.mxu0 %vm286_vm2, %v850_v7 }
 0x2b7   : > { %1185 = vmatmul.msk.f32.gmra.mxu2 %vm286_vm2, %v538_v10 }
 0x2bc   : > { %1192 = vmatmul.msk.f32.gmra.mxu3 %vm286_vm2, %v694_v25  ;;  %1200 = vmatmul.msk.f32.gmra.mxu0 %vm286_vm2, %v851_v38 }
 0x2bf   : > { %1186 = vmatmul.msk.f32.gmra.mxu2 %vm286_vm2, %v539_v27 }
 0x2c4   : > { %1193 = vmatmul.msk.f32.gmra.mxu3 %vm286_vm2, %v695_v35  ;;  %1201 = vmatmul.msk.f32.gmra.mxu0 %vm286_vm2, %v852_v34 }
 0x2cc   : > { %1194 = vmatmul.msk.f32.gmra.mxu3 %vm286_vm2, %v696_v47  ;;  %1202 = vmatmul.msk.f32.gmra.mxu0 %vm286_vm2, %v853_v24 }
 0x2ef   : > { %v930_v46 = vpop.permute.xlu2 %929 }
 0x2f2   : > { %v904_v18 = vpop.permute.xlu0 %903 }
 0x2f3   : > { %v939_v36 = vsel %vm286_vm2, %v1722_v6, %v904_v18 }
 0x2f7   : > { %v908_v44 = vpop.permute.xlu2 %907 }
 0x2f8   : > { %v941_v58 = vsel %vm286_vm2, %v1712_v49, %v908_v44 }
 0x2ff   : > { %v916_v48 = vpop.permute.xlu1 %915 }
 0x300   : > { %v944_v39 = vsel %vm943_vm10, %v939_v36, %v916_v48 }
 0x307   : > { %v928_v43 = vpop.permute.xlu1 %927 }
 0x308   : > { %v949_v30 = vsel %vm948_vm11, %v944_v39, %v928_v43  ;;  %v918_v45 = vpop.permute.xlu0 %917 }
 0x309   : > { %953 = vst [vmem:[%s1786_s28] sm:$0xff] %v949_v30 }
 0x30f   : > { %v906_v50 = vpop.permute.xlu1 %905 }
 0x310   : > { %v940_v51 = vsel %vm286_vm2, %v1717_v42, %v906_v50  ;;  %v932_v52 = vpop.permute.xlu0 %931 }
 0x311   : > { %v945_v54 = vsel %vm943_vm10, %v940_v51, %v918_v45 }
 0x312   : > { %v950_v55 = vsel %vm948_vm11, %v945_v54, %v930_v46 }
 0x313   : > { %954 = vst [vmem:[%s1786_s28 + $0x8] sm:$0xff] %v950_v55 }
 0x318   : > { %v920_v59 = vpop.permute.xlu1 %919  ;;  %v910_v60 = vpop.permute.xlu0 %909 }
 0x319   : > { %v946_v61 = vsel %vm943_vm10, %v941_v58, %v920_v59  ;;  %v942_v63 = vsel %vm286_vm2, %v1707_v3, %v910_v60 }
 0x31a   : > { %v951_v53 = vsel %vm948_vm11, %v946_v61, %v932_v52 }
 0x31b   : > { %955 = vst [vmem:[%s1786_s28 + $0x10] sm:$0xff] %v951_v53 }
 0x320   : > { %v934_v1 = vpop.permute.xlu1 %933  ;;  %v922_v41 = vpop.permute.xlu0 %921 }
 0x321   : > { %v947_v2 = vsel %vm943_vm10, %v942_v63, %v922_v41 }
 0x322   : > { %v952_v0 = vsel %vm948_vm11, %v947_v2, %v934_v1 }
 0x323   : > { %956 = vst [vmem:[%s1786_s28 + $0x18] sm:$0xff] %v952_v0 }
 0x32a   : > { %v569_v4 = vpop.f32.mrf.mxu2 }
 0x32b   : > { %v581_v5 = vsel %vm1495_vm1, 1.0, %v569_v4 }
 0x32c   : > { %v585_v9 = vand.u32 2147483647, %v581_v5 }
 0x32e   : > { %961 = vrot.lane.b32.xlu2 %v585_v9, %s1392_s26 }
 0x331   : > { %v883_v40 = vpop.f32.mrf.mxu0 }
 0x332   : > { %v895_v33 = vsel %vm1495_vm1, 1.0, %v883_v40  ;;  %v572_v12 = vpop.f32.mrf.mxu2 }
 0x333   : > { %v899_v62 = vand.u32 2147483647, %v895_v33  ;;  %v582_v6 = vsel %vm1528_vm5, 1.0, %v572_v12 }
 0x334   : > { %v586_v56 = vand.u32 2147483647, %v582_v6 }
 0x335   : > { %993 = vrot.lane.b32.xlu1 %v899_v62, %s1391_s25 }
 0x337   : > { %v726_v11 = vpop.f32.mrf.mxu3 }
 0x338   : > { %v738_v3 = vsel %vm1495_vm1, 1.0, %v726_v11 }
 0x339   : > { %v742_v49 = vand.u32 2147483647, %v738_v3  ;;  %v886_v42 = vpop.f32.mrf.mxu0 }
 0x33a   : > { %v575_v19 = vpop.f32.mrf.mxu2 }
 0x33b   : > { %977 = vrot.lane.b32.xlu0 %v742_v49, %s1390_s24  ;;  %v583_v20 = vsel %vm1505_vm3, 1.0, %v575_v19 }
 0x33c   : > { %v587_v7 = vand.u32 2147483647, %v583_v20 }
 0x33f   : > { %v729_v8 = vpop.f32.mrf.mxu3 }
 0x340   : > { %v739_v22 = vsel %vm1528_vm5, 1.0, %v729_v8 }
 0x341   : > { %v743_v14 = vand.u32 2147483647, %v739_v22  ;;  %v889_v15 = vpop.f32.mrf.mxu0 }
 0x342   : > { %v578_v26 = vpop.f32.mrf.mxu2 }
 0x343   : > { %979 = vrot.lane.b32.xlu1 %v743_v14, %s1390_s24  ;;  %963 = vrot.lane.b32.xlu0 %v586_v56, %s1392_s26  ;;  %v584_v10 = vsel %vm1520_vm4, 1.0, %v578_v26 }
 0x344   : > { %v588_v13 = vand.u32 2147483647, %v584_v10 }
 0x347   : > { %v732_v37 = vpop.f32.mrf.mxu3 }
 0x348   : > { %v740_v23 = vsel %vm1505_vm3, 1.0, %v732_v37 }
 0x349   : > { %v744_v38 = vand.u32 2147483647, %v740_v23  ;;  %v892_v25 = vpop.f32.mrf.mxu0 }
 0x34a   : > { %v898_v27 = vsel %vm1520_vm4, 1.0, %v892_v25 }
 0x34b   : > { %981 = vrot.lane.b32.xlu2 %v744_v38, %s1390_s24  ;;  %965 = vrot.lane.b32.xlu1 %v587_v7, %s1392_s26  ;;  %v902_v32 = vand.u32 2147483647, %v898_v27 }
 0x34f   : > { %v735_v57 = vpop.f32.mrf.mxu3 }
 0x350   : > { %v741_v28 = vsel %vm1520_vm4, 1.0, %v735_v57 }
 0x351   : > { %v745_v34 = vand.u32 2147483647, %v741_v28 }
 0x352   : > { %1321 = shalt.err (!%p1318_p5)
}
 0x353   : > { %s1393_s5 = smov 128   ;;  %s1394_s6 = smov 256   ;;  %983 = vrot.lane.b32.xlu0 %v745_v34, %s1390_s24  ;;  %999 = vrot.lane.b32.xlu1 %v902_v32, %s1391_s25  ;;  %v897_v16 = vsel %vm1505_vm3, 1.0, %v889_v15  ;;  %v896_v24 = vsel %vm1528_vm5, 1.0, %v886_v42  ;;  %v408_v18 = vpop.f32.mrf.mxu1 }
 0x354   : > { %s1395_s7 = smov 8   ;;  %967 = vrot.lane.b32.xlu2 %v588_v13, %s1392_s26  ;;  %v901_v47 = vand.u32 2147483647, %v897_v16  ;;  %v900_v35 = vand.u32 2147483647, %v896_v24  ;;  %v420_v39 = vsel %vm1495_vm1, 1.0, %v408_v18 }
 0x355   : > { %1211 = dma.vmem_to_hbm [thread:$0]  (%p1454_p6), %s1830_s29, 512, %s1041_s8, %s1022_s16, %s1393_s5, %s1394_s6, %s1395_s7   ;;  %v424_v30 = vand.u32 2147483647, %v420_v39 }
 0x356   : > { %s1873_s24 = scalar_lea.vmem [#allocation5], %s1165_s27  ;;  %s1053_s27 = scalar_lea.hbm %s1934_s3, %s1828_s30 }
 0x357   : > { %s1054_s29 = sshll.u32 %s1873_s24, 4  ;;  %s1056_s8 = sshll.u32 %s1053_s27, 4  ;;  %s1055_s29 = int_to_ptr.vmem [resolvable:$true] %s1054_s29  ;;  %s1057_s8 = int_to_ptr.hbm [resolvable:$true] %s1056_s8 }
 0x358   : > { %s1027_s16 = scalar_lea.sflag [#allocation6], %s1473_s4  ;;  %s1336_s9 = sshra.s32 %s1057_s8, 4  ;;  %s1337_s9 = int_to_ptr.hbm [resolvable:$true] %s1336_s9 }
 0x359   : > { %s1338_s10 = scalar_lea.hbm %s1337_s9, 32  ;;  %s1342_s17 = scalar_lea.hbm %s1934_s3, 64 }
 0x35a   : > { %p1339_p7 = scmp.ne.s32.totalorder %s1337_s9, %s1338_s10  ;;  %p1343_p12 = scmp.lt.s32.totalorder %s1337_s9, %s1934_s3 }
 0x35b   : > { %997 = vrot.lane.b32.xlu0 %v901_v47, %s1391_s25  ;;  %v411_v43 = vpop.f32.mrf.mxu1  ;;  %p1344_p13 = scmp.lt.s32.totalorder %s1342_s17, %s1338_s10 }
 0x35c   : > { %995 = vrot.lane.b32.xlu2 %v900_v35, %s1391_s25  ;;  %v421_v17 = vsel %vm1528_vm5, 1.0, %v411_v43  ;;  %p1340_p10 = pnand %p1339_p7, %p1454_p6 }
 0x35d   : > { %v425_v44 = vand.u32 2147483647, %v421_v17  ;;  %p1345_p0 = por %p1344_p13, %p1343_p12 }
 0x35e   : > { %p1341_p11 = pneg %p1340_p10 }
 0x360   : > { %p1346_p1 = pnand %p1345_p0, %p1341_p11 }
 0x363   : > { %v414_v55 = vpop.f32.mrf.mxu1 }
 0x364   : > { %v422_v0 = vsel %vm1505_vm3, 1.0, %v414_v55 }
 0x365   : > { %v426_v29 = vand.u32 2147483647, %v422_v0 }
 0x36b   : > { %v417_v1 = vpop.f32.mrf.mxu1 }
 0x36c   : > { %v423_v31 = vsel %vm1520_vm4, 1.0, %v417_v1 }
 0x36d   : > { %v427_v2 = vand.u32 2147483647, %v423_v31 }
 0x388   : > { %v962_v48 = vpop.permute.xlu2 %961 }
 0x389   : > { %v1005_v45 = vsel %vm286_vm2, %v424_v30, %v962_v48 }
 0x3a5   : > { %v982_v36 = vpop.permute.xlu2 %981 }
 0x3a7   : > { %v994_v46 = vpop.permute.xlu1 %993 }
 0x3ad   : > { %v978_v50 = vpop.permute.xlu0 %977 }
 0x3ae   : > { %v968_v51 = vpop.permute.xlu2 %967  ;;  %v1009_v52 = vsel %vm943_vm10, %v1005_v45, %v978_v50 }
 0x3af   : > { %v1013_v54 = vsel %vm948_vm11, %v1009_v52, %v994_v46  ;;  %v1008_v4 = vsel %vm286_vm2, %v427_v2, %v968_v51 }
 0x3b0   : > { %1017 = vst [vmem:[%s1873_s24] sm:$0xff] %v1013_v54 }
 0x3b5   : > { %v980_v58 = vpop.permute.xlu1 %979  ;;  %v964_v59 = vpop.permute.xlu0 %963 }
 0x3b6   : > { %v1006_v60 = vsel %vm286_vm2, %v425_v44, %v964_v59  ;;  %v996_v61 = vpop.permute.xlu2 %995 }
 0x3b7   : > { %v1010_v53 = vsel %vm943_vm10, %v1006_v60, %v980_v58 }
 0x3b8   : > { %v1014_v63 = vsel %vm948_vm11, %v1010_v53, %v996_v61 }
 0x3b9   : > { %1018 = vst [vmem:[%s1873_s24 + $0x8] sm:$0xff] %v1014_v63 }
 0x3bd   : > { %v966_v41 = vpop.permute.xlu1 %965 }
 0x3be   : > { %v1007_v21 = vsel %vm286_vm2, %v426_v29, %v966_v41 }
 0x3bf   : > { %v1011_v62 = vsel %vm943_vm10, %v1007_v21, %v982_v36 }
 0x3c5   : > { %v1000_v5 = vpop.permute.xlu1 %999  ;;  %v984_v9 = vpop.permute.xlu0 %983 }
 0x3c6   : > { %v1012_v40 = vsel %vm943_vm10, %v1008_v4, %v984_v9 }
 0x3c7   : > { %v1016_v33 = vsel %vm948_vm11, %v1012_v40, %v1000_v5 }
 0x3c8   : > { %1020 = vst [vmem:[%s1873_s24 + $0x18] sm:$0xff] %v1016_v33 }
 0x3cd   : > { %v998_v11 = vpop.permute.xlu0 %997 }
 0x3ce   : > { %v1015_v12 = vsel %vm948_vm11, %v1011_v62, %v998_v11 }
 0x3cf   : > { %1019 = vst [vmem:[%s1873_s24 + $0x10] sm:$0xff] %v1015_v12 }
 0x3d0   : > { %1349 = shalt.err (!%p1346_p1)
}
 0x3d1   : > { %1212 = dma.vmem_to_hbm [thread:$0]  (%p1454_p6), %s1055_s29, 512, %s1057_s8, %s1027_s16, %s1393_s5, %s1394_s6, %s1395_s7  }
 0x3d2 PF: > { %s1071_s4 = sand.u32 1, %s1376_s12   ;;  %p1216_p2 = pnand %p1160_p9, %p1458_p8 }
 0x3d3   : > { %s1072_s28 = scalar_lea.sflag [#allocation4], %s1071_s4 }
 0x3d4   : > { %p1217_p3 = pneg %p1216_p2 }
 0x3d6   : > { %1367 = dma.done.wait (%p1217_p3), %s1072_s28, 512  }
 0x3d7   : > { %1369 = vsyncadd (%p1217_p3), %s1072_s28, 4294966784  ;;  %s1082_s24 = scalar_lea.sflag [#allocation6], %s1071_s4 }
 0x3d8   : > { %1371 = dma.done.wait (%p1217_p3), %s1082_s24, 512  }
 0x3d9   : > { %1373 = vsyncadd (%p1217_p3), %s1082_s24, 4294966784  ;;  %p17_p6 = scmp.ge.s32.totalorder %s1439_s18, 4   ;;  %s1945_s12 = smov %s1380_s13 }
 0x3da   : > { %s1946_s13 = smov %s1384_s14  ;;  %s1947_s14 = smov %s1452_s21 }
 0x3db   : > { %s1948_s15 = smov %s1439_s18  ;;  %19 = sbr.rel (!%p17_p6) target bundleno = 5 (0x5), region = 123 }
 0x3e0   :  { %1088 = vsyncpa [#allocation4], 1 }
 0x3e1   :  { %1090 = vsyncpa [#allocation4 + $0x1], 1 }
 0x3e2   :  { %1091 = vsyncpa [#allocation6], 1 }
 0x3e3   :  { %1093 = vsyncpa [#allocation6 + $0x1], 1 }

</bundles_post_ra>
